<compile_context>
chip_gen: v7x
topology: tpu7x:2x2x1
jax: 0.10.0
libtpu: 0.0.40
codegen_flags: <defaults>
</compile_context>

<pallas_src>
import functools

import jax
import jax.numpy as jnp
from jax import lax
from jax.experimental import pallas as pl
from jax.experimental.pallas import tpu as pltpu

# ---- model hyper-parameters (small, consistent with the module) -------------
BATCH = 2
SEQ = 8
HIDDEN = 32
NUM_HEADS = 4
HEAD_SIZE = HIDDEN // NUM_HEADS  # 8


def _round_up(v, m):
    return ((v + m - 1) // m) * m


def gpt2_attention_kernel(x_ref, wq_ref, wk_ref, wv_ref,
                          bq_ref, bk_ref, bv_ref, wo_ref, bo_ref,
                          o_ref, *, batch_per_step, num_heads, compute_dtype):
    """One grid step handles `batch_per_step` batch rows (flattened).

    x_ref  : (BB*S, H)
    wq/wk/wv_ref : (H, H)        (already transposed, compute_dtype)
    bq/bk/bv_ref : (1, H)        (f32)
    wo_ref : (H, OUT_PAD)        (already transposed, lane-padded, compute_dtype)
    bo_ref : (1, OUT_PAD)        (f32)
    o_ref  : (BB*S, OUT_PAD)
    """
    BB = batch_per_step
    S = x_ref.shape[0] // BB
    H = x_ref.shape[1]
    HS = H // num_heads
    OUT_PAD = o_ref.shape[1]

    x = x_ref[...].astype(compute_dtype)                       # (BB*S, H)

    inv_sqrt_dk = jnp.float32(1.0 / (HS ** 0.5))

    # Three QKV matmuls (each result starts at lane 0 — no lane extraction
    # from a 3H-wide slab).  Scale folded into Q once; casts hoisted out of
    # the head loop.
    q_all = ((jnp.dot(x, wq_ref[...], preferred_element_type=jnp.float32)
              + bq_ref[...]) * inv_sqrt_dk).astype(compute_dtype)
    k_all = (jnp.dot(x, wk_ref[...], preferred_element_type=jnp.float32)
             + bk_ref[...]).astype(compute_dtype)
    v_all = (jnp.dot(x, wv_ref[...], preferred_element_type=jnp.float32)
             + bv_ref[...]).astype(compute_dtype)

    # Causal mask: compile-time constant, built once, reused for all (b, h).
    row = lax.broadcasted_iota(jnp.int32, (S, S), 0)
    col = lax.broadcasted_iota(jnp.int32, (S, S), 1)
    causal_mask = col > row

    bo = bo_ref[...]                                            # (1, OUT_PAD)

    # TODO(synk): dropout1 (post-softmax) / dropout2 (post-W_O) are identity
    # in eval mode and are not implemented.

    for b in range(BB):                          # static unroll (BB small)
        r0, r1 = b * S, (b + 1) * S
        acc = jnp.zeros((S, OUT_PAD), jnp.float32)
        for h in range(num_heads):               # static unroll
            c0, c1 = h * HS, (h + 1) * HS
            qh = q_all[r0:r1, c0:c1]
            kh = k_all[r0:r1, c0:c1]
            vh = v_all[r0:r1, c0:c1]

            # scores = Q_h K_h^T without materialising a transpose.
            s = lax.dot_general(qh, kh, (((1,), (1,)), ((), ())),
                                preferred_element_type=jnp.float32)
            s = jnp.where(causal_mask, -jnp.inf, s)             # mask in f32

            # softmax over the source axis (f32 throughout).
            m = jnp.max(s, axis=-1, keepdims=True)
            e = jnp.exp(s - m)
            p = e * pl.reciprocal(jnp.sum(e, axis=-1, keepdims=True),
                                  approx=True)

            # W_O folded into the head loop: both matmuls are lane-dense
            # (..., OUT_PAD=128-wide) and the per-head result accumulates
            # straight into the f32 output accumulator (no scratch slab).
            vwo = jnp.dot(vh, wo_ref[c0:c1, :],
                          preferred_element_type=jnp.float32)   # (S, OUT_PAD)
            acc = acc + jnp.dot(p.astype(compute_dtype),
                                vwo.astype(compute_dtype),
                                preferred_element_type=jnp.float32)

        # Full-width (unmasked) vst: OUT_PAD is a multiple of 128 and the
        # sublane offset r0 is a multiple of 8.
        o_ref[r0:r1, :] = (acc + bo).astype(o_ref.dtype)


def gpt2_attention(x, w_qkv, b_qkv, w_o, b_o, *, num_heads=NUM_HEADS,
                   compute_dtype=jnp.float32, batch_per_step=None):
    """x: (B, S, H).  w_qkv: (3H, H), w_o: (H, H) in torch nn.Linear layout."""
    B, S, H = x.shape
    assert H % num_heads == 0

    if batch_per_step is None:
        # Toy sizes: whole batch in one grid step (no per-step overhead).
        # TODO(synk): at production sizes keep >=2 steps per core so DMA
        # double-buffering can overlap compute.
        batch_per_step = B
    assert B % batch_per_step == 0
    steps = B // batch_per_step
    rows = batch_per_step * S

    out_pad = _round_up(H, 128)   # lane-dense output (full 128-lane stores)

    # torch nn.Linear: y = x @ W.T + b ; W_QKV rows ordered [Q; K; V].
    w_qkv_t = w_qkv.T                                             # (H, 3H)
    w_q = w_qkv_t[:, 0 * H:1 * H].astype(compute_dtype)
    w_k = w_qkv_t[:, 1 * H:2 * H].astype(compute_dtype)
    w_v = w_qkv_t[:, 2 * H:3 * H].astype(compute_dtype)
    b_q = b_qkv[0 * H:1 * H].reshape(1, H).astype(jnp.float32)
    b_k = b_qkv[1 * H:2 * H].reshape(1, H).astype(jnp.float32)
    b_v = b_qkv[2 * H:3 * H].reshape(1, H).astype(jnp.float32)

    w_o_t = jnp.pad(w_o.T, ((0, 0), (0, out_pad - H))).astype(compute_dtype)
    b_o_2d = jnp.pad(b_o, (0, out_pad - H)).reshape(1, out_pad).astype(
        jnp.float32)

    x2d = x.reshape(B * S, H)

    kernel = functools.partial(gpt2_attention_kernel,
                               batch_per_step=batch_per_step,
                               num_heads=num_heads,
                               compute_dtype=compute_dtype)

    out2d = pl.pallas_call(
        kernel,
        out_shape=jax.ShapeDtypeStruct((B * S, out_pad), x.dtype),
        grid_spec=pltpu.PrefetchScalarGridSpec(
            num_scalar_prefetch=0,
            grid=(steps,),
            in_specs=[
                pl.BlockSpec((rows, H), lambda i: (i, 0)),       # x
                pl.BlockSpec((H, H), lambda i: (0, 0)),          # W_q
                pl.BlockSpec((H, H), lambda i: (0, 0)),          # W_k
                pl.BlockSpec((H, H), lambda i: (0, 0)),          # W_v
                pl.BlockSpec((1, H), lambda i: (0, 0)),          # b_q
                pl.BlockSpec((1, H), lambda i: (0, 0)),          # b_k
                pl.BlockSpec((1, H), lambda i: (0, 0)),          # b_v
                pl.BlockSpec((H, out_pad), lambda i: (0, 0)),    # W_o (padded)
                pl.BlockSpec((1, out_pad), lambda i: (0, 0)),    # b_o (padded)
            ],
            out_specs=pl.BlockSpec((rows, out_pad), lambda i: (i, 0)),
        ),
        compiler_params=pltpu.CompilerParams(
            dimension_semantics=("parallel",)),
    )(x2d, w_q, w_k, w_v, b_q, b_k, b_v, w_o_t, b_o_2d)

    return out2d.reshape(B, S, out_pad)[:, :, :H]


def reference_attention(x, w_qkv, b_qkv, w_o, b_o):
    """Pure-JAX replica of the PyTorch forward (f32), for correctness checks."""
    B, S, H = x.shape
    qkv = x @ w_qkv.T + b_qkv
    q, k, v = jnp.split(qkv, 3, axis=2)
    q = q.reshape(B, S, NUM_HEADS, HEAD_SIZE)
    k = k.reshape(B, S, NUM_HEADS, HEAD_SIZE)
    v = v.reshape(B, S, NUM_HEADS, HEAD_SIZE)
    tri = jnp.triu(jnp.ones((S, S), dtype=bool), k=1)
    qk = jnp.einsum('abcd,aecd->acbe', q, k)
    qk = jnp.where(tri, -jnp.inf, qk) / jnp.sqrt(jnp.float32(HEAD_SIZE))
    p = jax.nn.softmax(qk, axis=3)
    res = jnp.einsum('abcd,adbe->acbe', p, v)
    z = res.reshape(B, S, H)
    return z @ w_o.T + b_o


if __name__ == "__main__":
    key = jax.random.PRNGKey(0)
    kx, k1, k2, k3, k4 = jax.random.split(key, 5)

    # deterministic parameter init (torch nn.Linear-style uniform bounds)
    bound = 1.0 / jnp.sqrt(jnp.float32(HIDDEN))
    w_qkv = jax.random.uniform(k1, (3 * HIDDEN, HIDDEN), jnp.float32,
                               -bound, bound)
    b_qkv = jax.random.uniform(k2, (3 * HIDDEN,), jnp.float32, -bound, bound)
    w_o = jax.random.uniform(k3, (HIDDEN, HIDDEN), jnp.float32, -bound, bound)
    b_o = jax.random.uniform(k4, (HIDDEN,), jnp.float32, -bound, bound)

    x = jax.random.normal(kx, (BATCH, SEQ, HIDDEN), jnp.float32)

    ref = reference_attention(x, w_qkv, b_qkv, w_o, b_o)

    # 1) f32 operands, single grid step (default at toy sizes).
    out_f32 = jax.block_until_ready(gpt2_attention(x, w_qkv, b_qkv, w_o, b_o))
    assert out_f32.shape == (BATCH, SEQ, HIDDEN)
    # tolerance covers pl.reciprocal(approx=True) (~2^-12 relative) only
    assert jnp.allclose(out_f32, ref, atol=2e-3, rtol=2e-3), \
        "f32 kernel mismatch vs reference"

    # 2) f32 operands with grid=(B,) (one batch row per step) to verify the
    #    multi-step code path compiles and matches.
    out_alt = jax.block_until_ready(
        gpt2_attention(x, w_qkv, b_qkv, w_o, b_o, batch_per_step=1))
    assert jnp.allclose(out_alt, ref, atol=2e-3, rtol=2e-3), \
        "f32 kernel (per-batch grid) mismatch vs reference"

    # 3) bf16 matmul operands (MXU-native), f32 accumulation + f32 softmax.
    out_bf16 = jax.block_until_ready(
        gpt2_attention(x, w_qkv, b_qkv, w_o, b_o, compute_dtype=jnp.bfloat16))
    assert jnp.allclose(out_bf16, ref, atol=3e-2, rtol=3e-2), \
        "bf16 kernel deviates too much from f32 reference"

    print("KERNEL_OK")
</pallas_src>

<mosaic_0001>
module attributes {stable_mosaic.version = 11 : i64} {
  func.func @gpt2_attention_kernel(%arg0: i32, %arg1: memref<16x32xf32, #tpu.memory_space<vmem>>, %arg2: memref<32x32xf32, #tpu.memory_space<vmem>>, %arg3: memref<32x32xf32, #tpu.memory_space<vmem>>, %arg4: memref<32x32xf32, #tpu.memory_space<vmem>>, %arg5: memref<1x32xf32, #tpu.memory_space<vmem>>, %arg6: memref<1x32xf32, #tpu.memory_space<vmem>>, %arg7: memref<1x32xf32, #tpu.memory_space<vmem>>, %arg8: memref<32x128xf32, #tpu.memory_space<vmem>>, %arg9: memref<1x128xf32, #tpu.memory_space<vmem>>, %arg10: memref<16x128xf32, #tpu.memory_space<vmem>>) attributes {dimension_semantics = [#tpu.dimension_semantics<parallel>], iteration_bounds = array<i64: 1>, scalar_prefetch = 0 : i64, scratch_operands = 0 : i64, tpu.core_type = #tpu.core_type<tc>, window_params = [{transform_indices = @transform_0, window_bounds = array<i64: 16, 32>}, {pipeline_mode = #tpu.pipeline_mode<synchronous>, transform_indices = @transform_1, window_bounds = array<i64: 32, 32>}, {pipeline_mode = #tpu.pipeline_mode<synchronous>, transform_indices = @transform_2, window_bounds = array<i64: 32, 32>}, {pipeline_mode = #tpu.pipeline_mode<synchronous>, transform_indices = @transform_3, window_bounds = array<i64: 32, 32>}, {pipeline_mode = #tpu.pipeline_mode<synchronous>, transform_indices = @transform_4, window_bounds = array<i64: 1, 32>}, {pipeline_mode = #tpu.pipeline_mode<synchronous>, transform_indices = @transform_5, window_bounds = array<i64: 1, 32>}, {pipeline_mode = #tpu.pipeline_mode<synchronous>, transform_indices = @transform_6, window_bounds = array<i64: 1, 32>}, {pipeline_mode = #tpu.pipeline_mode<synchronous>, transform_indices = @transform_7, window_bounds = array<i64: 32, 128>}, {pipeline_mode = #tpu.pipeline_mode<synchronous>, transform_indices = @transform_8, window_bounds = array<i64: 1, 128>}, {transform_indices = @transform_9, window_bounds = array<i64: 16, 128>}]} {
    %c0 = arith.constant 0 : index
    %c0_0 = arith.constant 0 : index
    %0 = vector.load %arg1[%c0, %c0_0] : memref<16x32xf32, #tpu.memory_space<vmem>>, vector<16x32xf32>
    %c0_1 = arith.constant 0 : index
    %c0_2 = arith.constant 0 : index
    %1 = vector.load %arg2[%c0_1, %c0_2] : memref<32x32xf32, #tpu.memory_space<vmem>>, vector<32x32xf32>
    %cst = arith.constant dense<0.000000e+00> : vector<16x32xf32>
    %2 = tpu.matmul %0, %1, %cst {dimension_numbers = #tpu.dot_dimension_numbers<[1], [0], [0], [1], [0, 0, 1, 1], [], []>} : vector<16x32xf32>, vector<32x32xf32>, vector<16x32xf32> -> vector<16x32xf32>
    %c0_3 = arith.constant 0 : index
    %c0_4 = arith.constant 0 : index
    %3 = vector.load %arg5[%c0_3, %c0_4] : memref<1x32xf32, #tpu.memory_space<vmem>>, vector<1x32xf32>
    %4 = vector.broadcast %3 : vector<1x32xf32> to vector<16x32xf32>
    %5 = arith.addf %2, %4 : vector<16x32xf32>
    %cst_5 = arith.constant 0.353553385 : f32
    %6 = vector.broadcast %cst_5 : f32 to vector<16x32xf32>
    %7 = arith.mulf %5, %6 : vector<16x32xf32>
    %c0_6 = arith.constant 0 : index
    %c0_7 = arith.constant 0 : index
    %8 = vector.load %arg3[%c0_6, %c0_7] : memref<32x32xf32, #tpu.memory_space<vmem>>, vector<32x32xf32>
    %cst_8 = arith.constant dense<0.000000e+00> : vector<16x32xf32>
    %9 = tpu.matmul %0, %8, %cst_8 {dimension_numbers = #tpu.dot_dimension_numbers<[1], [0], [0], [1], [0, 0, 1, 1], [], []>} : vector<16x32xf32>, vector<32x32xf32>, vector<16x32xf32> -> vector<16x32xf32>
    %c0_9 = arith.constant 0 : index
    %c0_10 = arith.constant 0 : index
    %10 = vector.load %arg6[%c0_9, %c0_10] : memref<1x32xf32, #tpu.memory_space<vmem>>, vector<1x32xf32>
    %11 = vector.broadcast %10 : vector<1x32xf32> to vector<16x32xf32>
    %12 = arith.addf %9, %11 : vector<16x32xf32>
    %c0_11 = arith.constant 0 : index
    %c0_12 = arith.constant 0 : index
    %13 = vector.load %arg4[%c0_11, %c0_12] : memref<32x32xf32, #tpu.memory_space<vmem>>, vector<32x32xf32>
    %cst_13 = arith.constant dense<0.000000e+00> : vector<16x32xf32>
    %14 = tpu.matmul %0, %13, %cst_13 {dimension_numbers = #tpu.dot_dimension_numbers<[1], [0], [0], [1], [0, 0, 1, 1], [], []>} : vector<16x32xf32>, vector<32x32xf32>, vector<16x32xf32> -> vector<16x32xf32>
    %c0_14 = arith.constant 0 : index
    %c0_15 = arith.constant 0 : index
    %15 = vector.load %arg7[%c0_14, %c0_15] : memref<1x32xf32, #tpu.memory_space<vmem>>, vector<1x32xf32>
    %16 = vector.broadcast %15 : vector<1x32xf32> to vector<16x32xf32>
    %17 = arith.addf %14, %16 : vector<16x32xf32>
    %18 = tpu.iota {dimensions = array<i32: 0>} : vector<8x8xi32>
    %19 = tpu.iota {dimensions = array<i32: 1>} : vector<8x8xi32>
    %20 = arith.cmpi sgt, %19, %18 : vector<8x8xi32>
    %c0_16 = arith.constant 0 : index
    %c0_17 = arith.constant 0 : index
    %21 = vector.load %arg9[%c0_16, %c0_17] : memref<1x128xf32, #tpu.memory_space<vmem>>, vector<1x128xf32>
    %cst_18 = arith.constant 0.000000e+00 : f32
    %22 = vector.broadcast %cst_18 : f32 to vector<8x128xf32>
    %23 = vector.extract_strided_slice %7 {offsets = [0, 0], sizes = [8, 8], strides = [1, 1]} : vector<16x32xf32> to vector<8x8xf32>
    %24 = vector.extract_strided_slice %12 {offsets = [0, 0], sizes = [8, 8], strides = [1, 1]} : vector<16x32xf32> to vector<8x8xf32>
    %25 = vector.extract_strided_slice %17 {offsets = [0, 0], sizes = [8, 8], strides = [1, 1]} : vector<16x32xf32> to vector<8x8xf32>
    %cst_19 = arith.constant dense<0.000000e+00> : vector<8x8xf32>
    %26 = tpu.matmul %23, %24, %cst_19 {dimension_numbers = #tpu.dot_dimension_numbers<[1], [1], [0], [0], [0, 0, 1, 0], [], []>} : vector<8x8xf32>, vector<8x8xf32>, vector<8x8xf32> -> vector<8x8xf32>
    %cst_20 = arith.constant 0xFF800000 : f32
    %27 = vector.broadcast %cst_20 : f32 to vector<8x8xf32>
    %28 = arith.select %20, %27, %26 : vector<8x8xi1>, vector<8x8xf32>
    %cst_21 = arith.constant dense<0xFF800000> : vector<8xf32>
    %29 = vector.multi_reduction <maximumf>, %28, %cst_21 [1] : vector<8x8xf32> to vector<8xf32>
    %30 = vector.shape_cast %29 : vector<8xf32> to vector<8x1xf32>
    %31 = vector.broadcast %30 : vector<8x1xf32> to vector<8x8xf32>
    %32 = arith.subf %28, %31 : vector<8x8xf32>
    %33 = math.exp %32 : vector<8x8xf32>
    %cst_22 = arith.constant dense<0.000000e+00> : vector<8xf32>
    %34 = vector.multi_reduction <add>, %33, %cst_22 [1] : vector<8x8xf32> to vector<8xf32>
    %35 = vector.shape_cast %34 : vector<8xf32> to vector<8x1xf32>
    %36 = tpu.reciprocal %35 {approx = true} : vector<8x1xf32> -> vector<8x1xf32>
    %37 = vector.broadcast %36 : vector<8x1xf32> to vector<8x8xf32>
    %38 = arith.mulf %33, %37 : vector<8x8xf32>
    %c0_23 = arith.constant 0 : index
    %c0_24 = arith.constant 0 : index
    %39 = vector.load %arg8[%c0_23, %c0_24] : memref<32x128xf32, #tpu.memory_space<vmem>>, vector<8x128xf32>
    %cst_25 = arith.constant dense<0.000000e+00> : vector<8x128xf32>
    %40 = tpu.matmul %25, %39, %cst_25 {dimension_numbers = #tpu.dot_dimension_numbers<[1], [0], [0], [1], [0, 0, 1, 1], [], []>} : vector<8x8xf32>, vector<8x128xf32>, vector<8x128xf32> -> vector<8x128xf32>
    %cst_26 = arith.constant dense<0.000000e+00> : vector<8x128xf32>
    %41 = tpu.matmul %38, %40, %cst_26 {dimension_numbers = #tpu.dot_dimension_numbers<[1], [0], [0], [1], [0, 0, 1, 1], [], []>} : vector<8x8xf32>, vector<8x128xf32>, vector<8x128xf32> -> vector<8x128xf32>
    %42 = arith.addf %22, %41 : vector<8x128xf32>
    %43 = vector.extract_strided_slice %7 {offsets = [0, 8], sizes = [8, 8], strides = [1, 1]} : vector<16x32xf32> to vector<8x8xf32>
    %44 = vector.extract_strided_slice %12 {offsets = [0, 8], sizes = [8, 8], strides = [1, 1]} : vector<16x32xf32> to vector<8x8xf32>
    %45 = vector.extract_strided_slice %17 {offsets = [0, 8], sizes = [8, 8], strides = [1, 1]} : vector<16x32xf32> to vector<8x8xf32>
    %cst_27 = arith.constant dense<0.000000e+00> : vector<8x8xf32>
    %46 = tpu.matmul %43, %44, %cst_27 {dimension_numbers = #tpu.dot_dimension_numbers<[1], [1], [0], [0], [0, 0, 1, 0], [], []>} : vector<8x8xf32>, vector<8x8xf32>, vector<8x8xf32> -> vector<8x8xf32>
    %cst_28 = arith.constant 0xFF800000 : f32
    %47 = vector.broadcast %cst_28 : f32 to vector<8x8xf32>
    %48 = arith.select %20, %47, %46 : vector<8x8xi1>, vector<8x8xf32>
    %cst_29 = arith.constant dense<0xFF800000> : vector<8xf32>
    %49 = vector.multi_reduction <maximumf>, %48, %cst_29 [1] : vector<8x8xf32> to vector<8xf32>
    %50 = vector.shape_cast %49 : vector<8xf32> to vector<8x1xf32>
    %51 = vector.broadcast %50 : vector<8x1xf32> to vector<8x8xf32>
    %52 = arith.subf %48, %51 : vector<8x8xf32>
    %53 = math.exp %52 : vector<8x8xf32>
    %cst_30 = arith.constant dense<0.000000e+00> : vector<8xf32>
    %54 = vector.multi_reduction <add>, %53, %cst_30 [1] : vector<8x8xf32> to vector<8xf32>
    %55 = vector.shape_cast %54 : vector<8xf32> to vector<8x1xf32>
    %56 = tpu.reciprocal %55 {approx = true} : vector<8x1xf32> -> vector<8x1xf32>
    %57 = vector.broadcast %56 : vector<8x1xf32> to vector<8x8xf32>
    %58 = arith.mulf %53, %57 : vector<8x8xf32>
    %c8 = arith.constant 8 : index
    %c0_31 = arith.constant 0 : index
    %59 = vector.load %arg8[%c8, %c0_31] : memref<32x128xf32, #tpu.memory_space<vmem>>, vector<8x128xf32>
    %cst_32 = arith.constant dense<0.000000e+00> : vector<8x128xf32>
    %60 = tpu.matmul %45, %59, %cst_32 {dimension_numbers = #tpu.dot_dimension_numbers<[1], [0], [0], [1], [0, 0, 1, 1], [], []>} : vector<8x8xf32>, vector<8x128xf32>, vector<8x128xf32> -> vector<8x128xf32>
    %cst_33 = arith.constant dense<0.000000e+00> : vector<8x128xf32>
    %61 = tpu.matmul %58, %60, %cst_33 {dimension_numbers = #tpu.dot_dimension_numbers<[1], [0], [0], [1], [0, 0, 1, 1], [], []>} : vector<8x8xf32>, vector<8x128xf32>, vector<8x128xf32> -> vector<8x128xf32>
    %62 = arith.addf %42, %61 : vector<8x128xf32>
    %63 = vector.extract_strided_slice %7 {offsets = [0, 16], sizes = [8, 8], strides = [1, 1]} : vector<16x32xf32> to vector<8x8xf32>
    %64 = vector.extract_strided_slice %12 {offsets = [0, 16], sizes = [8, 8], strides = [1, 1]} : vector<16x32xf32> to vector<8x8xf32>
    %65 = vector.extract_strided_slice %17 {offsets = [0, 16], sizes = [8, 8], strides = [1, 1]} : vector<16x32xf32> to vector<8x8xf32>
    %cst_34 = arith.constant dense<0.000000e+00> : vector<8x8xf32>
    %66 = tpu.matmul %63, %64, %cst_34 {dimension_numbers = #tpu.dot_dimension_numbers<[1], [1], [0], [0], [0, 0, 1, 0], [], []>} : vector<8x8xf32>, vector<8x8xf32>, vector<8x8xf32> -> vector<8x8xf32>
    %cst_35 = arith.constant 0xFF800000 : f32
    %67 = vector.broadcast %cst_35 : f32 to vector<8x8xf32>
    %68 = arith.select %20, %67, %66 : vector<8x8xi1>, vector<8x8xf32>
    %cst_36 = arith.constant dense<0xFF800000> : vector<8xf32>
    %69 = vector.multi_reduction <maximumf>, %68, %cst_36 [1] : vector<8x8xf32> to vector<8xf32>
    %70 = vector.shape_cast %69 : vector<8xf32> to vector<8x1xf32>
    %71 = vector.broadcast %70 : vector<8x1xf32> to vector<8x8xf32>
    %72 = arith.subf %68, %71 : vector<8x8xf32>
    %73 = math.exp %72 : vector<8x8xf32>
    %cst_37 = arith.constant dense<0.000000e+00> : vector<8xf32>
    %74 = vector.multi_reduction <add>, %73, %cst_37 [1] : vector<8x8xf32> to vector<8xf32>
    %75 = vector.shape_cast %74 : vector<8xf32> to vector<8x1xf32>
    %76 = tpu.reciprocal %75 {approx = true} : vector<8x1xf32> -> vector<8x1xf32>
    %77 = vector.broadcast %76 : vector<8x1xf32> to vector<8x8xf32>
    %78 = arith.mulf %73, %77 : vector<8x8xf32>
    %c16 = arith.constant 16 : index
    %c0_38 = arith.constant 0 : index
    %79 = vector.load %arg8[%c16, %c0_38] : memref<32x128xf32, #tpu.memory_space<vmem>>, vector<8x128xf32>
    %cst_39 = arith.constant dense<0.000000e+00> : vector<8x128xf32>
    %80 = tpu.matmul %65, %79, %cst_39 {dimension_numbers = #tpu.dot_dimension_numbers<[1], [0], [0], [1], [0, 0, 1, 1], [], []>} : vector<8x8xf32>, vector<8x128xf32>, vector<8x128xf32> -> vector<8x128xf32>
    %cst_40 = arith.constant dense<0.000000e+00> : vector<8x128xf32>
    %81 = tpu.matmul %78, %80, %cst_40 {dimension_numbers = #tpu.dot_dimension_numbers<[1], [0], [0], [1], [0, 0, 1, 1], [], []>} : vector<8x8xf32>, vector<8x128xf32>, vector<8x128xf32> -> vector<8x128xf32>
    %82 = arith.addf %62, %81 : vector<8x128xf32>
    %83 = vector.extract_strided_slice %7 {offsets = [0, 24], sizes = [8, 8], strides = [1, 1]} : vector<16x32xf32> to vector<8x8xf32>
    %84 = vector.extract_strided_slice %12 {offsets = [0, 24], sizes = [8, 8], strides = [1, 1]} : vector<16x32xf32> to vector<8x8xf32>
    %85 = vector.extract_strided_slice %17 {offsets = [0, 24], sizes = [8, 8], strides = [1, 1]} : vector<16x32xf32> to vector<8x8xf32>
    %cst_41 = arith.constant dense<0.000000e+00> : vector<8x8xf32>
    %86 = tpu.matmul %83, %84, %cst_41 {dimension_numbers = #tpu.dot_dimension_numbers<[1], [1], [0], [0], [0, 0, 1, 0], [], []>} : vector<8x8xf32>, vector<8x8xf32>, vector<8x8xf32> -> vector<8x8xf32>
    %cst_42 = arith.constant 0xFF800000 : f32
    %87 = vector.broadcast %cst_42 : f32 to vector<8x8xf32>
    %88 = arith.select %20, %87, %86 : vector<8x8xi1>, vector<8x8xf32>
    %cst_43 = arith.constant dense<0xFF800000> : vector<8xf32>
    %89 = vector.multi_reduction <maximumf>, %88, %cst_43 [1] : vector<8x8xf32> to vector<8xf32>
    %90 = vector.shape_cast %89 : vector<8xf32> to vector<8x1xf32>
    %91 = vector.broadcast %90 : vector<8x1xf32> to vector<8x8xf32>
    %92 = arith.subf %88, %91 : vector<8x8xf32>
    %93 = math.exp %92 : vector<8x8xf32>
    %cst_44 = arith.constant dense<0.000000e+00> : vector<8xf32>
    %94 = vector.multi_reduction <add>, %93, %cst_44 [1] : vector<8x8xf32> to vector<8xf32>
    %95 = vector.shape_cast %94 : vector<8xf32> to vector<8x1xf32>
    %96 = tpu.reciprocal %95 {approx = true} : vector<8x1xf32> -> vector<8x1xf32>
    %97 = vector.broadcast %96 : vector<8x1xf32> to vector<8x8xf32>
    %98 = arith.mulf %93, %97 : vector<8x8xf32>
    %c24 = arith.constant 24 : index
    %c0_45 = arith.constant 0 : index
    %99 = vector.load %arg8[%c24, %c0_45] : memref<32x128xf32, #tpu.memory_space<vmem>>, vector<8x128xf32>
    %cst_46 = arith.constant dense<0.000000e+00> : vector<8x128xf32>
    %100 = tpu.matmul %85, %99, %cst_46 {dimension_numbers = #tpu.dot_dimension_numbers<[1], [0], [0], [1], [0, 0, 1, 1], [], []>} : vector<8x8xf32>, vector<8x128xf32>, vector<8x128xf32> -> vector<8x128xf32>
    %cst_47 = arith.constant dense<0.000000e+00> : vector<8x128xf32>
    %101 = tpu.matmul %98, %100, %cst_47 {dimension_numbers = #tpu.dot_dimension_numbers<[1], [0], [0], [1], [0, 0, 1, 1], [], []>} : vector<8x8xf32>, vector<8x128xf32>, vector<8x128xf32> -> vector<8x128xf32>
    %102 = arith.addf %82, %101 : vector<8x128xf32>
    %103 = vector.broadcast %21 : vector<1x128xf32> to vector<8x128xf32>
    %104 = arith.addf %102, %103 : vector<8x128xf32>
    %c0_48 = arith.constant 0 : index
    %c0_49 = arith.constant 0 : index
    %105 = vector.load %arg10[%c0_48, %c0_49] : memref<16x128xf32, #tpu.memory_space<vmem>>, vector<8x128xf32>
    tpu.vector_store %arg10[%c0_48, %c0_49], %104 {strides = array<i32>} : memref<16x128xf32, #tpu.memory_space<vmem>>, vector<8x128xf32>,
    %cst_50 = arith.constant 0.000000e+00 : f32
    %106 = vector.broadcast %cst_50 : f32 to vector<8x128xf32>
    %107 = vector.extract_strided_slice %7 {offsets = [8, 0], sizes = [8, 8], strides = [1, 1]} : vector<16x32xf32> to vector<8x8xf32>
    %108 = vector.extract_strided_slice %12 {offsets = [8, 0], sizes = [8, 8], strides = [1, 1]} : vector<16x32xf32> to vector<8x8xf32>
    %109 = vector.extract_strided_slice %17 {offsets = [8, 0], sizes = [8, 8], strides = [1, 1]} : vector<16x32xf32> to vector<8x8xf32>
    %cst_51 = arith.constant dense<0.000000e+00> : vector<8x8xf32>
    %110 = tpu.matmul %107, %108, %cst_51 {dimension_numbers = #tpu.dot_dimension_numbers<[1], [1], [0], [0], [0, 0, 1, 0], [], []>} : vector<8x8xf32>, vector<8x8xf32>, vector<8x8xf32> -> vector<8x8xf32>
    %cst_52 = arith.constant 0xFF800000 : f32
    %111 = vector.broadcast %cst_52 : f32 to vector<8x8xf32>
    %112 = arith.select %20, %111, %110 : vector<8x8xi1>, vector<8x8xf32>
    %cst_53 = arith.constant dense<0xFF800000> : vector<8xf32>
    %113 = vector.multi_reduction <maximumf>, %112, %cst_53 [1] : vector<8x8xf32> to vector<8xf32>
    %114 = vector.shape_cast %113 : vector<8xf32> to vector<8x1xf32>
    %115 = vector.broadcast %114 : vector<8x1xf32> to vector<8x8xf32>
    %116 = arith.subf %112, %115 : vector<8x8xf32>
    %117 = math.exp %116 : vector<8x8xf32>
    %cst_54 = arith.constant dense<0.000000e+00> : vector<8xf32>
    %118 = vector.multi_reduction <add>, %117, %cst_54 [1] : vector<8x8xf32> to vector<8xf32>
    %119 = vector.shape_cast %118 : vector<8xf32> to vector<8x1xf32>
    %120 = tpu.reciprocal %119 {approx = true} : vector<8x1xf32> -> vector<8x1xf32>
    %121 = vector.broadcast %120 : vector<8x1xf32> to vector<8x8xf32>
    %122 = arith.mulf %117, %121 : vector<8x8xf32>
    %c0_55 = arith.constant 0 : index
    %c0_56 = arith.constant 0 : index
    %123 = vector.load %arg8[%c0_55, %c0_56] : memref<32x128xf32, #tpu.memory_space<vmem>>, vector<8x128xf32>
    %cst_57 = arith.constant dense<0.000000e+00> : vector<8x128xf32>
    %124 = tpu.matmul %109, %123, %cst_57 {dimension_numbers = #tpu.dot_dimension_numbers<[1], [0], [0], [1], [0, 0, 1, 1], [], []>} : vector<8x8xf32>, vector<8x128xf32>, vector<8x128xf32> -> vector<8x128xf32>
    %cst_58 = arith.constant dense<0.000000e+00> : vector<8x128xf32>
    %125 = tpu.matmul %122, %124, %cst_58 {dimension_numbers = #tpu.dot_dimension_numbers<[1], [0], [0], [1], [0, 0, 1, 1], [], []>} : vector<8x8xf32>, vector<8x128xf32>, vector<8x128xf32> -> vector<8x128xf32>
    %126 = arith.addf %106, %125 : vector<8x128xf32>
    %127 = vector.extract_strided_slice %7 {offsets = [8, 8], sizes = [8, 8], strides = [1, 1]} : vector<16x32xf32> to vector<8x8xf32>
    %128 = vector.extract_strided_slice %12 {offsets = [8, 8], sizes = [8, 8], strides = [1, 1]} : vector<16x32xf32> to vector<8x8xf32>
    %129 = vector.extract_strided_slice %17 {offsets = [8, 8], sizes = [8, 8], strides = [1, 1]} : vector<16x32xf32> to vector<8x8xf32>
    %cst_59 = arith.constant dense<0.000000e+00> : vector<8x8xf32>
    %130 = tpu.matmul %127, %128, %cst_59 {dimension_numbers = #tpu.dot_dimension_numbers<[1], [1], [0], [0], [0, 0, 1, 0], [], []>} : vector<8x8xf32>, vector<8x8xf32>, vector<8x8xf32> -> vector<8x8xf32>
    %cst_60 = arith.constant 0xFF800000 : f32
    %131 = vector.broadcast %cst_60 : f32 to vector<8x8xf32>
    %132 = arith.select %20, %131, %130 : vector<8x8xi1>, vector<8x8xf32>
    %cst_61 = arith.constant dense<0xFF800000> : vector<8xf32>
    %133 = vector.multi_reduction <maximumf>, %132, %cst_61 [1] : vector<8x8xf32> to vector<8xf32>
    %134 = vector.shape_cast %133 : vector<8xf32> to vector<8x1xf32>
    %135 = vector.broadcast %134 : vector<8x1xf32> to vector<8x8xf32>
    %136 = arith.subf %132, %135 : vector<8x8xf32>
    %137 = math.exp %136 : vector<8x8xf32>
    %cst_62 = arith.constant dense<0.000000e+00> : vector<8xf32>
    %138 = vector.multi_reduction <add>, %137, %cst_62 [1] : vector<8x8xf32> to vector<8xf32>
    %139 = vector.shape_cast %138 : vector<8xf32> to vector<8x1xf32>
    %140 = tpu.reciprocal %139 {approx = true} : vector<8x1xf32> -> vector<8x1xf32>
    %141 = vector.broadcast %140 : vector<8x1xf32> to vector<8x8xf32>
    %142 = arith.mulf %137, %141 : vector<8x8xf32>
    %c8_63 = arith.constant 8 : index
    %c0_64 = arith.constant 0 : index
    %143 = vector.load %arg8[%c8_63, %c0_64] : memref<32x128xf32, #tpu.memory_space<vmem>>, vector<8x128xf32>
    %cst_65 = arith.constant dense<0.000000e+00> : vector<8x128xf32>
    %144 = tpu.matmul %129, %143, %cst_65 {dimension_numbers = #tpu.dot_dimension_numbers<[1], [0], [0], [1], [0, 0, 1, 1], [], []>} : vector<8x8xf32>, vector<8x128xf32>, vector<8x128xf32> -> vector<8x128xf32>
    %cst_66 = arith.constant dense<0.000000e+00> : vector<8x128xf32>
    %145 = tpu.matmul %142, %144, %cst_66 {dimension_numbers = #tpu.dot_dimension_numbers<[1], [0], [0], [1], [0, 0, 1, 1], [], []>} : vector<8x8xf32>, vector<8x128xf32>, vector<8x128xf32> -> vector<8x128xf32>
    %146 = arith.addf %126, %145 : vector<8x128xf32>
    %147 = vector.extract_strided_slice %7 {offsets = [8, 16], sizes = [8, 8], strides = [1, 1]} : vector<16x32xf32> to vector<8x8xf32>
    %148 = vector.extract_strided_slice %12 {offsets = [8, 16], sizes = [8, 8], strides = [1, 1]} : vector<16x32xf32> to vector<8x8xf32>
    %149 = vector.extract_strided_slice %17 {offsets = [8, 16], sizes = [8, 8], strides = [1, 1]} : vector<16x32xf32> to vector<8x8xf32>
    %cst_67 = arith.constant dense<0.000000e+00> : vector<8x8xf32>
    %150 = tpu.matmul %147, %148, %cst_67 {dimension_numbers = #tpu.dot_dimension_numbers<[1], [1], [0], [0], [0, 0, 1, 0], [], []>} : vector<8x8xf32>, vector<8x8xf32>, vector<8x8xf32> -> vector<8x8xf32>
    %cst_68 = arith.constant 0xFF800000 : f32
    %151 = vector.broadcast %cst_68 : f32 to vector<8x8xf32>
    %152 = arith.select %20, %151, %150 : vector<8x8xi1>, vector<8x8xf32>
    %cst_69 = arith.constant dense<0xFF800000> : vector<8xf32>
    %153 = vector.multi_reduction <maximumf>, %152, %cst_69 [1] : vector<8x8xf32> to vector<8xf32>
    %154 = vector.shape_cast %153 : vector<8xf32> to vector<8x1xf32>
    %155 = vector.broadcast %154 : vector<8x1xf32> to vector<8x8xf32>
    %156 = arith.subf %152, %155 : vector<8x8xf32>
    %157 = math.exp %156 : vector<8x8xf32>
    %cst_70 = arith.constant dense<0.000000e+00> : vector<8xf32>
    %158 = vector.multi_reduction <add>, %157, %cst_70 [1] : vector<8x8xf32> to vector<8xf32>
    %159 = vector.shape_cast %158 : vector<8xf32> to vector<8x1xf32>
    %160 = tpu.reciprocal %159 {approx = true} : vector<8x1xf32> -> vector<8x1xf32>
    %161 = vector.broadcast %160 : vector<8x1xf32> to vector<8x8xf32>
    %162 = arith.mulf %157, %161 : vector<8x8xf32>
    %c16_71 = arith.constant 16 : index
    %c0_72 = arith.constant 0 : index
    %163 = vector.load %arg8[%c16_71, %c0_72] : memref<32x128xf32, #tpu.memory_space<vmem>>, vector<8x128xf32>
    %cst_73 = arith.constant dense<0.000000e+00> : vector<8x128xf32>
    %164 = tpu.matmul %149, %163, %cst_73 {dimension_numbers = #tpu.dot_dimension_numbers<[1], [0], [0], [1], [0, 0, 1, 1], [], []>} : vector<8x8xf32>, vector<8x128xf32>, vector<8x128xf32> -> vector<8x128xf32>
    %cst_74 = arith.constant dense<0.000000e+00> : vector<8x128xf32>
    %165 = tpu.matmul %162, %164, %cst_74 {dimension_numbers = #tpu.dot_dimension_numbers<[1], [0], [0], [1], [0, 0, 1, 1], [], []>} : vector<8x8xf32>, vector<8x128xf32>, vector<8x128xf32> -> vector<8x128xf32>
    %166 = arith.addf %146, %165 : vector<8x128xf32>
    %167 = vector.extract_strided_slice %7 {offsets = [8, 24], sizes = [8, 8], strides = [1, 1]} : vector<16x32xf32> to vector<8x8xf32>
    %168 = vector.extract_strided_slice %12 {offsets = [8, 24], sizes = [8, 8], strides = [1, 1]} : vector<16x32xf32> to vector<8x8xf32>
    %169 = vector.extract_strided_slice %17 {offsets = [8, 24], sizes = [8, 8], strides = [1, 1]} : vector<16x32xf32> to vector<8x8xf32>
    %cst_75 = arith.constant dense<0.000000e+00> : vector<8x8xf32>
    %170 = tpu.matmul %167, %168, %cst_75 {dimension_numbers = #tpu.dot_dimension_numbers<[1], [1], [0], [0], [0, 0, 1, 0], [], []>} : vector<8x8xf32>, vector<8x8xf32>, vector<8x8xf32> -> vector<8x8xf32>
    %cst_76 = arith.constant 0xFF800000 : f32
    %171 = vector.broadcast %cst_76 : f32 to vector<8x8xf32>
    %172 = arith.select %20, %171, %170 : vector<8x8xi1>, vector<8x8xf32>
    %cst_77 = arith.constant dense<0xFF800000> : vector<8xf32>
    %173 = vector.multi_reduction <maximumf>, %172, %cst_77 [1] : vector<8x8xf32> to vector<8xf32>
    %174 = vector.shape_cast %173 : vector<8xf32> to vector<8x1xf32>
    %175 = vector.broadcast %174 : vector<8x1xf32> to vector<8x8xf32>
    %176 = arith.subf %172, %175 : vector<8x8xf32>
    %177 = math.exp %176 : vector<8x8xf32>
    %cst_78 = arith.constant dense<0.000000e+00> : vector<8xf32>
    %178 = vector.multi_reduction <add>, %177, %cst_78 [1] : vector<8x8xf32> to vector<8xf32>
    %179 = vector.shape_cast %178 : vector<8xf32> to vector<8x1xf32>
    %180 = tpu.reciprocal %179 {approx = true} : vector<8x1xf32> -> vector<8x1xf32>
    %181 = vector.broadcast %180 : vector<8x1xf32> to vector<8x8xf32>
    %182 = arith.mulf %177, %181 : vector<8x8xf32>
    %c24_79 = arith.constant 24 : index
    %c0_80 = arith.constant 0 : index
    %183 = vector.load %arg8[%c24_79, %c0_80] : memref<32x128xf32, #tpu.memory_space<vmem>>, vector<8x128xf32>
    %cst_81 = arith.constant dense<0.000000e+00> : vector<8x128xf32>
    %184 = tpu.matmul %169, %183, %cst_81 {dimension_numbers = #tpu.dot_dimension_numbers<[1], [0], [0], [1], [0, 0, 1, 1], [], []>} : vector<8x8xf32>, vector<8x128xf32>, vector<8x128xf32> -> vector<8x128xf32>
    %cst_82 = arith.constant dense<0.000000e+00> : vector<8x128xf32>
    %185 = tpu.matmul %182, %184, %cst_82 {dimension_numbers = #tpu.dot_dimension_numbers<[1], [0], [0], [1], [0, 0, 1, 1], [], []>} : vector<8x8xf32>, vector<8x128xf32>, vector<8x128xf32> -> vector<8x128xf32>
    %186 = arith.addf %166, %185 : vector<8x128xf32>
    %187 = vector.broadcast %21 : vector<1x128xf32> to vector<8x128xf32>
    %188 = arith.addf %186, %187 : vector<8x128xf32>
    %c8_83 = arith.constant 8 : index
    %c0_84 = arith.constant 0 : index
    %189 = vector.load %arg10[%c8_83, %c0_84] : memref<16x128xf32, #tpu.memory_space<vmem>>, vector<8x128xf32>
    tpu.vector_store %arg10[%c8_83, %c0_84], %188 {strides = array<i32>} : memref<16x128xf32, #tpu.memory_space<vmem>>, vector<8x128xf32>,
    return
  }
  func.func @transform_0(%arg0: i32) -> (i32, i32) {
    %c0_i32 = arith.constant 0 : i32
    %c0_i32_0 = arith.constant 0 : i32
    return %arg0, %c0_i32 : i32, i32
  }
  func.func @transform_1(%arg0: i32) -> (i32, i32) {
    %c0_i32 = arith.constant 0 : i32
    %c0_i32_0 = arith.constant 0 : i32
    %c0_i32_1 = arith.constant 0 : i32
    return %c0_i32, %c0_i32_0 : i32, i32
  }
  func.func @transform_2(%arg0: i32) -> (i32, i32) {
    %c0_i32 = arith.constant 0 : i32
    %c0_i32_0 = arith.constant 0 : i32
    %c0_i32_1 = arith.constant 0 : i32
    return %c0_i32, %c0_i32_0 : i32, i32
  }
  func.func @transform_3(%arg0: i32) -> (i32, i32) {
    %c0_i32 = arith.constant 0 : i32
    %c0_i32_0 = arith.constant 0 : i32
    %c0_i32_1 = arith.constant 0 : i32
    return %c0_i32, %c0_i32_0 : i32, i32
  }
  func.func @transform_4(%arg0: i32) -> (i32, i32) {
    %c0_i32 = arith.constant 0 : i32
    %c0_i32_0 = arith.constant 0 : i32
    %c0_i32_1 = arith.constant 0 : i32
    return %c0_i32, %c0_i32_0 : i32, i32
  }
  func.func @transform_5(%arg0: i32) -> (i32, i32) {
    %c0_i32 = arith.constant 0 : i32
    %c0_i32_0 = arith.constant 0 : i32
    %c0_i32_1 = arith.constant 0 : i32
    return %c0_i32, %c0_i32_0 : i32, i32
  }
  func.func @transform_6(%arg0: i32) -> (i32, i32) {
    %c0_i32 = arith.constant 0 : i32
    %c0_i32_0 = arith.constant 0 : i32
    %c0_i32_1 = arith.constant 0 : i32
    return %c0_i32, %c0_i32_0 : i32, i32
  }
  func.func @transform_7(%arg0: i32) -> (i32, i32) {
    %c0_i32 = arith.constant 0 : i32
    %c0_i32_0 = arith.constant 0 : i32
    %c0_i32_1 = arith.constant 0 : i32
    return %c0_i32, %c0_i32_0 : i32, i32
  }
  func.func @transform_8(%arg0: i32) -> (i32, i32) {
    %c0_i32 = arith.constant 0 : i32
    %c0_i32_0 = arith.constant 0 : i32
    %c0_i32_1 = arith.constant 0 : i32
    return %c0_i32, %c0_i32_0 : i32, i32
  }
  func.func @transform_9(%arg0: i32) -> (i32, i32) {
    %c0_i32 = arith.constant 0 : i32
    %c0_i32_0 = arith.constant 0 : i32
    return %arg0, %c0_i32 : i32, i32
  }
}

</mosaic_0001>

<bundles_post_ra>
// kernel: tpu_custom_call.1
= control target key start
LH: loop header
LB: loop body
LE: loop exit
PB: predicated region body
PF: predicated region fallthrough
CT: control target
= control target key end

     0   :  { %14 = vsyncpa [#allocation3], 0  ;;  %s3174_s0 = inlined_call_operand.hbm [shape: f32[16,32], index: 0, kind: input, shape index: {}]   ;;  %s3175_s1 = inlined_call_operand.hbm [shape: f32[32,32], index: 1, kind: input, shape index: {}]   ;;  %s3176_s2 = inlined_call_operand.hbm [shape: f32[32,32], index: 2, kind: input, shape index: {}]   ;;  %s3177_s3 = inlined_call_operand.hbm [shape: f32[32,32], index: 3, kind: input, shape index: {}]   ;;  %s3178_s4 = inlined_call_operand.vmem [shape: f32[1,32], index: 4, kind: input, shape index: {}]   ;;  %s3179_s5 = inlined_call_operand.vmem [shape: f32[1,32], index: 5, kind: input, shape index: {}]   ;;  %s3180_s6 = inlined_call_operand.vmem [shape: f32[1,32], index: 6, kind: input, shape index: {}]   ;;  %s3181_s7 = inlined_call_operand.hbm [shape: f32[32,128], index: 7, kind: input, shape index: {}]   ;;  %s3182_s8 = inlined_call_operand.vmem [shape: f32[1,128], index: 8, kind: input, shape index: {}]   ;;  %s3183_s9 = inlined_call_operand.hbm [shape: f32[16,128], index: 9, kind: output, shape index: {}]  }
   0x1   :  { %15 = vsyncpa [#allocation6], 0 }
   0x2   :  { %16 = vsyncpa [#allocation9], 0 }
   0x3   :  { %17 = vsyncpa [#allocation4], 0  ;;  %s2778_s30 = smov [#allocation5]   ;;  %s2779_s11 = smov [#allocation8]  }
   0x4   :  { %s35_s10 = sshll.u32 %s2778_s30, 4  ;;  %s59_s12 = sshll.u32 %s2779_s11, 4  ;;  %s36_s10 = int_to_ptr.vmem [resolvable:$true] %s35_s10  ;;  %s2841_s12 = int_to_ptr.vmem [resolvable:$true] %s59_s12 }
   0x5   :  { %s2638_s15 = scalar_lea.hbm %s3175_s1, 512 }
   0x6   :  { %p2639_p0 = scmp.ne.s32.totalorder %s3175_s1, %s2638_s15  ;;  %p2642_p1 = scmp.lt.u32.totalorder %s2638_s15, %s3175_s1 }
   0x8   :  { %p2644_p2 = pnand %p2642_p1, %p2639_p0 }
   0xa   :  { %2647 = shalt.err (!%p2644_p2)
}
   0xb   :  { %s2648_s20 = scalar_lea.vmem %s36_s10, 512  ;;  %p2653_p4 = scmp.lt.s32.totalorder %s36_s10, %s36_s10 }
   0xc   :  { %p2649_p3 = scmp.ne.s32.totalorder %s36_s10, %s2648_s20  ;;  %p2654_p5 = scmp.lt.s32.totalorder %s2648_s20, %s2648_s20 }
   0xe   :  { %p2655_p6 = por %p2654_p5, %p2653_p4 }
  0x10   :  { %p2656_p7 = pnand %p2655_p6, %p2649_p3 }
  0x12   :  { %2659 = shalt.err (!%p2656_p7)
}
  0x13   :  { %s2780_s21 = smov 128   ;;  %s2781_s22 = smov 8  }
  0x14   :  { %41 = dma.hbm_to_vmem [thread:$0]  %s3175_s1, 512, %s36_s10, [#allocation6], %s2780_s21, %s2780_s21, %s2781_s22  }
  0x15   :  { %s2660_s27 = scalar_lea.hbm %s3177_s3, 512 }
  0x16   :  { %p2661_p8 = scmp.ne.s32.totalorder %s3177_s3, %s2660_s27  ;;  %p2664_p9 = scmp.lt.u32.totalorder %s2660_s27, %s3177_s3 }
  0x18   :  { %p2666_p10 = pnand %p2664_p9, %p2661_p8 }
  0x1a   :  { %2669 = shalt.err (!%p2666_p10)
}
  0x1b   :  { %s2670_s13 = scalar_lea.vmem %s2841_s12, 512  ;;  %p2675_p12 = scmp.lt.s32.totalorder %s2841_s12, %s2841_s12 }
  0x1c   :  { %p2671_p11 = scmp.ne.s32.totalorder %s2841_s12, %s2670_s13  ;;  %p2676_p13 = scmp.lt.s32.totalorder %s2670_s13, %s2670_s13 }
  0x1e   :  { %p2677_p0 = por %p2676_p13, %p2675_p12 }
  0x20   :  { %p2678_p1 = pnand %p2677_p0, %p2671_p11 }
  0x22   :  { %2681 = shalt.err (!%p2678_p1)
}
  0x23   :  { %65 = dma.hbm_to_vmem [thread:$0]  %s3177_s3, 512, %s2841_s12, [#allocation9], %s2780_s21, %s2780_s21, %s2781_s22  }
  0x24   :  { %s2782_s14 = smov [#allocation2]   ;;  %s2783_s16 = smov [#allocation7]  }
  0x25   :  { %s23_s15 = sshll.u32 %s2782_s14, 4  ;;  %s47_s17 = sshll.u32 %s2783_s16, 4  ;;  %s24_s15 = int_to_ptr.vmem [resolvable:$true] %s23_s15  ;;  %s2878_s17 = int_to_ptr.vmem [resolvable:$true] %s47_s17 }
  0x26   :  { %s2682_s20 = scalar_lea.hbm %s3174_s0, 256 }
  0x27   :  { %p2683_p2 = scmp.ne.s32.totalorder %s3174_s0, %s2682_s20  ;;  %p2686_p3 = scmp.lt.u32.totalorder %s2682_s20, %s3174_s0 }
  0x29   :  { %p2688_p4 = pnand %p2686_p3, %p2683_p2 }
  0x2b   :  { %2691 = shalt.err (!%p2688_p4)
}
  0x2c   :  { %s2692_s3 = scalar_lea.vmem %s24_s15, 256  ;;  %p2697_p6 = scmp.lt.s32.totalorder %s24_s15, %s24_s15 }
  0x2d   :  { %p2693_p5 = scmp.ne.s32.totalorder %s24_s15, %s2692_s3  ;;  %p2698_p7 = scmp.lt.s32.totalorder %s2692_s3, %s2692_s3 }
  0x2f   :  { %p2699_p8 = por %p2698_p7, %p2697_p6 }
  0x31   :  { %p2700_p9 = pnand %p2699_p8, %p2693_p5 }
  0x33   :  { %2703 = shalt.err (!%p2700_p9)
}
  0x34   :  { %29 = dma.hbm_to_vmem [thread:$0]  %s3174_s0, 256, %s24_s15, [#allocation3], %s2780_s21, %s2780_s21, %s2781_s22  }
  0x35   :  { %s2704_s30 = scalar_lea.hbm %s3176_s2, 512 }
  0x36   :  { %p2705_p10 = scmp.ne.s32.totalorder %s3176_s2, %s2704_s30  ;;  %p2708_p11 = scmp.lt.u32.totalorder %s2704_s30, %s3176_s2 }
  0x38   :  { %p2710_p12 = pnand %p2708_p11, %p2705_p10 }
  0x3a   :  { %2713 = shalt.err (!%p2710_p12)
}
  0x3b   :  { %s2714_s14 = scalar_lea.vmem %s2878_s17, 512  ;;  %p2719_p0 = scmp.lt.s32.totalorder %s2878_s17, %s2878_s17 }
  0x3c   :  { %p2715_p13 = scmp.ne.s32.totalorder %s2878_s17, %s2714_s14  ;;  %p2720_p1 = scmp.lt.s32.totalorder %s2714_s14, %s2714_s14 }
  0x3e   :  { %p2721_p2 = por %p2720_p1, %p2719_p0 }
  0x40   :  { %p2722_p3 = pnand %p2721_p2, %p2715_p13 }
  0x42   :  { %2725 = shalt.err (!%p2722_p3)
}
  0x43   :  { %53 = dma.hbm_to_vmem [thread:$0]  %s3176_s2, 512, %s2878_s17, [#allocation6], %s2780_s21, %s2780_s21, %s2781_s22  }
  0x44   :  { %s2784_s16 = smov [#allocation10]   ;;  %s2726_s23 = scalar_lea.hbm %s3181_s7, 512 }
  0x45   :  { %s77_s18 = sshll.u32 %s2784_s16, 4  ;;  %p2727_p4 = scmp.ne.s32.totalorder %s3181_s7, %s2726_s23  ;;  %s78_s18 = int_to_ptr.vmem [resolvable:$true] %s77_s18 }
  0x46   :  { %p2730_p5 = scmp.lt.u32.totalorder %s2726_s23, %s3181_s7 }
  0x48   :  { %p2732_p6 = pnand %p2730_p5, %p2727_p4 }
  0x4a   :  { %2735 = shalt.err (!%p2732_p6)
}
  0x4b   :  { %s2736_s12 = scalar_lea.vmem %s78_s18, 512  ;;  %p2741_p8 = scmp.lt.s32.totalorder %s78_s18, %s78_s18 }
  0x4c   :  { %p2737_p7 = scmp.ne.s32.totalorder %s78_s18, %s2736_s12  ;;  %p2742_p9 = scmp.lt.s32.totalorder %s2736_s12, %s2736_s12 }
  0x4e   :  { %p2743_p10 = por %p2742_p9, %p2741_p8 }
  0x50   :  { %p2744_p11 = pnand %p2743_p10, %p2737_p7 }
  0x52   :  { %2747 = shalt.err (!%p2744_p11)
}
  0x53   :  { %83 = dma.hbm_to_vmem [thread:$0]  %s3181_s7, 512, %s78_s18, [#allocation9], %s2780_s21, %s2780_s21, %s2781_s22  }
  0x54   :  { %2770 = dma.done.wait [#allocation3], 256  }
  0x55   :  { %2771 = vsyncadd [#allocation3], 4294967040 }
  0x56   :  { %2772 = dma.done.wait [#allocation6], 1024  }
  0x57   :  { %2773 = vsyncadd [#allocation6], 4294966272 }
  0x58   :  { %2774 = dma.done.wait [#allocation9], 1024  }
  0x59   :  { %2775 = vsyncadd [#allocation9], 4294966272  ;;  %v198_v0 = vld [vmem:[#allocation7] sm:$0xff]  ;;  %v199_v1 = vld [vmem:[#allocation7 + $0x8] sm:$0xff]  ;;  %vm114_vm0 = vcmask 261120   ;;  %v2785_v14 = vmov 0.0   ;;  %v370_v44 = vlaneseq }
  0x5a   :  { %v103_v2 = vld [vmem:[#allocation5] sm:$0xff]  ;;  %v2577_v3 = vpack.c.bf16 %v199_v1, %v198_v0  ;;  %v104_v4 = vld [vmem:[#allocation5 + $0x8] sm:$0xff]  ;;  %v200_v5 = vld [vmem:[#allocation7 + $0x10] sm:$0xff]  ;;  %vm2786_vm1 = vmmov 0   ;;  %vm376_vm2 = vcmask 64512   ;;  %s2787_s30 = smov 120  }
  0x5b   :  { %v201_v6 = vld [vmem:[#allocation7 + $0x18] sm:$0xff]  ;;  %v2569_v7 = vpack.c.bf16 %v104_v4, %v103_v2  ;;  %v105_v9 = vld [vmem:[#allocation5 + $0x10] sm:$0xff]  ;;  %v284_v15 = vld [vmem:[#allocation8] sm:$0xff]  ;;  %v371_v45 = vshrl.u32 %v370_v44, 7  ;;  %v373_v46 = vand.u32 127, %v370_v44  ;;  %s2789_s11 = smov 104  }
  0x5c   :  { %v2581_v8 = vpack.c.bf16 %v201_v6, %v200_v5  ;;  %v106_v10 = vld [vmem:[#allocation5 + $0x18] sm:$0xff]  ;;  %v101_v11 = vld [vmem:[#allocation2] sm:$0xff]  ;;  %2578 = vmatprep.subr.bf16.mxu1 %v2577_v3  ;;  %v285_v16 = vld [vmem:[#allocation8 + $0x8] sm:$0xff] }
  0x5d   :  { %v2573_v12 = vpack.c.bf16 %v106_v10, %v105_v9  ;;  %2435 = vmatprep.mubr.msk.f32.mxu1 %vm114_vm0, %v101_v11  ;;  %2570 = vmatprep.subr.bf16.mxu0 %v2569_v7  ;;  %v102_v13 = vld [vmem:[#allocation2 + $0x8] sm:$0xff]  ;;  %v286_v17 = vld [vmem:[#allocation8 + $0x10] sm:$0xff]  ;;  %v2585_v18 = vpack.c.bf16 %v285_v16, %v284_v15  ;;  %v2963_v32 = vld [vmem:[#allocation10] sm:$0xff]  ;;  %vm2992_vm3 = vcmp.gt.s32.totalorder %v373_v46, %v371_v45 }
  0x5e   :  { %2580 = vmatpush3.bf16.msra.mxu1 %v2577_v3  ;;  %2572 = vmatpush3.bf16.msra.mxu0 %v2569_v7  ;;  %v287_v19 = vld [vmem:[#allocation8 + $0x18] sm:$0xff]  ;;  %v2311_v21 = vld [vmem:[%s3179_s5] ss:$0 sm:$0xff]  ;;  %v2985_v43 = vld [vmem:[#allocation10 + $0x8] sm:$0xff] }
  0x5f   :  { %2582 = vmatprep.subr.bf16.mxu1 %v2581_v8  ;;  %2574 = vmatprep.subr.bf16.mxu0 %v2573_v12  ;;  %v2589_v20 = vpack.c.bf16 %v287_v19, %v286_v17  ;;  %v2308_v22 = vld [vmem:[%s3178_s4] ss:$0 sm:$0xff]  ;;  %v3054_v45 = vld [vmem:[#allocation10 + $0x18] sm:$0xff] }
  0x60   :  { %2424 = vmatprep.mubr.msk.f32.mxu0 %vm114_vm0, %v101_v11  ;;  %v2314_v33 = vld [vmem:[%s3180_s6] ss:$0 sm:$0xff]  ;;  %s2788_s6 = smov 112  }
  0x62   :  { %2584 = vmatpush3.bf16.msra.mxu1 %v2581_v8  ;;  %2576 = vmatpush3.bf16.msra.mxu0 %v2573_v12  ;;  %v3022_v12 = vld [vmem:[#allocation10 + $0x10] sm:$0xff] }
  0x63   :  { %2449 = vmatprep.subr.mxu1 %v2785_v14  ;;  %2586 = vmatprep.subr.bf16.mxu0 %v2585_v18 }
  0x65   :  { %2436 = vmatmul.mubr.msk.f32.vlgmr.msra.gmra.mrb[0].mxu1 %vm114_vm0, %v102_v13  ;;  %2425 = vmatmul.mubr.msk.f32.vlgmr.msra.gmra.mrb[0].mxu0 %vm114_vm0, %v102_v13 }
  0x66   :  { %2446 = vmatprep.mubr.msk.f32.mxu0 %vm114_vm0, %v101_v11  ;;  %2451 = vmatprep.mubr.msk.f32.mxu1 %vm2786_vm1, %v2785_v14 }
  0x67   :  { %2588 = vmatpush3.bf16.msra.mxu0 %v2585_v18 }
  0x68   :  { %2590 = vmatprep.subr.bf16.mxu0 %v2589_v20 }
  0x6b   :  { %2592 = vmatpush3.bf16.msra.mxu0 %v2589_v20 }
  0x6c   :  { %2459 = vmatprep.subr.mxu0 %v2785_v14 }
  0x6e   :  { %2447 = vmatmul.mubr.msk.f32.vlgmr.msra.gmra.mrb[2].mxu0 %vm114_vm0, %v102_v13 }
  0x6f   :  { %2461 = vmatprep.mubr.msk.f32.mxu0 %vm2786_vm1, %v2785_v14 }
 0x138   :  { %v2437_v23 = vpop.f32.mrb[0].mxu1  ;;  %v2426_v25 = vpop.f32.mrb[0].mxu0 }
 0x139   :  { %v2948_v24 = vadd.f32 %v2437_v23, %v2311_v21  ;;  %v275_v26 = vpop.f32.mrb[1].mxu1  ;;  %v2950_v27 = vadd.f32 %v2426_v25, %v2308_v22  ;;  %v187_v29 = vpop.f32.mrb[1].mxu0 }
 0x13a   :  { %v2952_v28 = vadd.f32 %v2311_v21, %v275_v26  ;;  %v188_v30 = vadd.f32 %v2308_v22, %v187_v29 }
 0x13b   :  { %v3043_v23 = vmul.f32 0.35355338, %v2950_v27 }
 0x13c   :  { %541 = vrot.lane.b32.xlu0 %v2952_v28, %s2787_s30  ;;  %2450 = vmatpush3.xpose.msk.msra.mxu1 %vm376_vm2, %v2952_v28  ;;  %v196_v31 = vmul.f32 0.35355338, %v188_v30 }
 0x13d   :  { %2454 = vmatprep.subr.mxu1 %v2785_v14 }
 0x13f   :  { %2452 = vmatmul.mubr.msk.f32.vlgmr.msra.gmra.mrb[2].mxu1 %vm376_vm2, %v196_v31 }
 0x140   :  { %539 = vrot.lane.b32.xlu0 %v196_v31, %s2787_s30  ;;  %2456 = vmatprep.mubr.msk.f32.mxu1 %vm2786_vm1, %v2785_v14 }
 0x141   :  { %2455 = vmatpush3.msra.mxu1 %v2963_v32  ;;  %v2448_v34 = vpop.f32.mrb[2].mxu0 }
 0x142   :  { %2464 = vmatprep.subr.mxu1 %v2785_v14  ;;  %v2970_v35 = vadd.f32 %v2448_v34, %v2314_v33  ;;  %v361_v36 = vpop.f32.mrb[3].mxu0 }
 0x143   :  { %v2972_v37 = vadd.f32 %v2314_v33, %v361_v36 }
 0x145   :  { %630 = vrot.lane.b32.xlu1 %v2972_v37, %s2787_s30  ;;  %2457 = vmatmul.mubr.msk.f32.vlgmr.msra.gmra.mrb[4].mxu1 %vm376_vm2, %v2972_v37 }
 0x146   :  { %2466 = vmatprep.mubr.msk.f32.mxu1 %vm2786_vm1, %v2785_v14  ;;  %2465 = vmatpush3.msra.mxu1 %v2985_v43 }
 0x147   :  { %2474 = vmatprep.subr.mxu1 %v2785_v14 }
 0x1ae   :  { %v542_v38 = vpop.permute.xlu0 %541 }
 0x1af   :  { %2460 = vmatpush3.xpose.msk.msra.mxu0 %vm376_vm2, %v542_v38 }
 0x1b0   :  { %2469 = vmatprep.subr.mxu0 %v2785_v14 }
 0x1b2   :  { %v540_v39 = vpop.permute.xlu0 %539 }
 0x1b3   :  { %2462 = vmatmul.mubr.msk.f32.vlgmr.msra.gmra.mrb[4].mxu0 %vm376_vm2, %v540_v39 }
 0x1b4   :  { %2471 = vmatprep.mubr.msk.f32.mxu0 %vm2786_vm1, %v2785_v14 }
 0x1b7   :  { %v631_v42 = vpop.permute.xlu1 %630 }
 0x1b8   :  { %2467 = vmatmul.mubr.msk.f32.vlgmr.msra.gmra.mrb[6].mxu1 %vm376_vm2, %v631_v42 }
 0x1b9   :  { %2476 = vmatprep.mubr.msk.f32.mxu1 %vm2786_vm1, %v2785_v14 }
 0x212   :  { %v449_v40 = vpop.f32.mrb[2].mxu1 }
 0x213   :  { %v2453_v41 = vpop.f32.mrb[3].mxu1  ;;  %v453_v54 = vsel %vm2992_vm3, -inf, %v449_v40 }
 0x214   :  { %v454_v55 = vsel %vm376_vm2, %v453_v54, -inf }
 0x218   :  { %v535_v52 = vpop.f32.mrb[4].mxu1 }
 0x219   :  { %v2458_v53 = vpop.f32.mrb[5].mxu1  ;;  %2475 = vmatpush3.msra.mxu1 %v535_v52 }
 0x21a   :  { %2484 = vmatprep.subr.mxu1 %v2785_v14 }
 0x286   :  { %v613_v48 = vpop.f32.mrb[4].mxu0 }
 0x287   :  { %v617_v49 = vsel %vm2992_vm3, -inf, %v613_v48  ;;  %v2463_v50 = vpop.f32.mrb[5].mxu0 }
 0x288   :  { %v618_v51 = vsel %vm376_vm2, %v617_v49, -inf }
 0x289   :  { %619 = vmax.xlane.f32.xlu1 %v618_v51 }
 0x28b   :  { %v700_v61 = vpop.f32.mrb[6].mxu1 }
 0x28c   :  { %v2468_v62 = vpop.f32.mrb[7].mxu1  ;;  %2470 = vmatpush3.msra.mxu0 %v700_v61 }
 0x28d   :  { %2479 = vmatprep.subr.mxu0 %v2785_v14 }
 0x29a   :  { %850 = vrot.lane.b32.xlu1 %v196_v31, %s2788_s6 }
 0x2be   :  { %455 = vmax.xlane.f32.xlu1 %v454_v55 }
 0x2cf   :  { %1091 = vrot.lane.b32.xlu1 %v2952_v28, %s2789_s11 }
 0x2d3   :  { %1089 = vrot.lane.b32.xlu1 %v196_v31, %s2789_s11 }
 0x316   :  { %v620_v56 = vpop.xlane.xlu1 %619 }
 0x317   :  { %v621_v57 = vsub.f32 %v617_v49, %v620_v56 }
 0x319   :  { %v622_v58 = vmul.f32 1.442695, %v621_v57 }
 0x31a   :  { %v851_v63 = vpop.permute.xlu1 %850 }
 0x31b   :  { %2606 = vpow2.f32 %v622_v58 }
 0x325   :  { %v2607_v59 = vpop.eup %2606 }
 0x326   :  { %v624_v60 = vsel %vm376_vm2, %v2607_v59, 0.0 }
 0x327   :  { %625 = vadd.xlane.f32.xlu0 %v624_v60 }
 0x33d   :  { %852 = vrot.lane.b32.xlu0 %v2952_v28, %s2788_s6 }
 0x34b   :  { %v456_v0 = vpop.xlane.xlu1 %455 }
 0x34c   :  { %v457_v1 = vsub.f32 %v453_v54, %v456_v0 }
 0x34e   :  { %v458_v2 = vmul.f32 1.442695, %v457_v1 }
 0x34f   :  { %v1092_v15 = vpop.permute.xlu1 %1091 }
 0x350   :  { %2608 = vpow2.f32 %v458_v2 }
 0x353   :  { %v1090_v16 = vpop.permute.xlu1 %1089 }
 0x35a   :  { %v2609_v3 = vpop.eup %2608 }
 0x35b   :  { %v460_v4 = vsel %vm376_vm2, %v2609_v3, 0.0 }
 0x35c   :  { %461 = vadd.xlane.f32.xlu0 %v460_v4 }
 0x372   :  { %941 = vrot.lane.b32.xlu0 %v2972_v37, %s2788_s6 }
 0x3b4   :  { %v626_v5 = vpop.xlane.xlu0 %625 }
 0x3b5   :  { %2610 = vrcp.f32 %v626_v5 }
 0x3b8   :  { %v853_v8 = vpop.permute.xlu0 %852 }
 0x3bf   :  { %v2611_v6 = vpop.eup %2610 }
 0x3c0   :  { %v628_v7 = vmul.f32 %v2611_v6, %v2607_v59 }
 0x3c2   :  { %2472 = vmatmul.mubr.msk.f32.vlgmr.msra.gmra.mrb[6].mxu0 %vm376_vm2, %v628_v7 }
 0x3c3   :  { %2480 = vmatpush3.xpose.msk.msra.mxu0 %vm376_vm2, %v853_v8  ;;  %2481 = vmatprep.mubr.msk.f32.mxu0 %vm2786_vm1, %v2785_v14 }
 0x3c4   :  { %2489 = vmatprep.subr.mxu0 %v2785_v14 }
 0x3c6   :  { %2482 = vmatmul.mubr.msk.f32.vlgmr.msra.gmra.mrb[8].mxu0 %vm376_vm2, %v851_v63 }
 0x3c7   :  { %2491 = vmatprep.mubr.msk.f32.mxu0 %vm2786_vm1, %v2785_v14 }
 0x3e9   :  { %v462_v9 = vpop.xlane.xlu0 %461 }
 0x3ea   :  { %2612 = vrcp.f32 %v462_v9 }
 0x3ed   :  { %v942_v13 = vpop.permute.xlu0 %941 }
 0x3f4   :  { %v2613_v10 = vpop.eup %2612 }
 0x3f5   :  { %v464_v11 = vmul.f32 %v2613_v10, %v2609_v3 }
 0x3f7   :  { %2477 = vmatmul.mubr.msk.f32.vlgmr.msra.gmra.mrb[8].mxu1 %vm376_vm2, %v464_v11 }
 0x3f8   :  { %2485 = vmatpush3.msra.mxu1 %v3022_v12  ;;  %2486 = vmatprep.mubr.msk.f32.mxu1 %vm2786_vm1, %v2785_v14 }
 0x3f9   :  { %2494 = vmatprep.subr.mxu1 %v2785_v14 }
 0x3fb   :  { %2487 = vmatmul.mubr.msk.f32.vlgmr.msra.gmra.mrb[10].mxu1 %vm376_vm2, %v942_v13 }
 0x3fc   :  { %2496 = vmatprep.mubr.msk.f32.mxu1 %vm2786_vm1, %v2785_v14 }
 0x3ff   :  { %2495 = vmatpush3.xpose.msk.msra.mxu1 %vm376_vm2, %v1092_v15 }
 0x400   :  { %2504 = vmatprep.subr.mxu1 %v2785_v14 }
 0x402   :  { %2497 = vmatmul.mubr.msk.f32.vlgmr.msra.gmra.mrb[12].mxu1 %vm376_vm2, %v1090_v16 }
 0x403   :  { %2506 = vmatprep.mubr.msk.f32.mxu1 %vm2786_vm1, %v2785_v14 }
 0x495   :  { %v773_v17 = vpop.f32.mrb[6].mxu0 }
 0x496   :  { %v2473_v18 = vpop.f32.mrb[7].mxu0 }
 0x499   :  { %v924_v19 = vpop.f32.mrb[8].mxu0 }
 0x49a   :  { %v928_v20 = vsel %vm2992_vm3, -inf, %v924_v19  ;;  %v2483_v21 = vpop.f32.mrb[9].mxu0 }
 0x49b   :  { %v929_v22 = vsel %vm376_vm2, %v928_v20, -inf }
 0x49c   :  { %930 = vmax.xlane.f32.xlu0 %v929_v22 }
 0x4b2   :  { %1180 = vrot.lane.b32.xlu0 %v2972_v37, %s2789_s11 }
 0x4b6   :  { %1498 = vrot.lane.b32.xlu0 %v3043_v23, %s2787_s30 }
 0x4ca   :  { %v846_v25 = vpop.f32.mrb[8].mxu1 }
 0x4cb   :  { %v847_v26 = vadd.f32 %v846_v25, %v773_v17  ;;  %v2478_v28 = vpop.f32.mrb[9].mxu1  ;;  %v3112_v17 = vld [vmem:[%s3182_s8] ss:$0 sm:$0xff]  ;;  %s2790_s8 = smov [#allocation11]  }
 0x4cc   :  { %s2294_s10 = sshll.u32 %s2790_s8, 4  ;;  %s2295_s10 = int_to_ptr.vmem [resolvable:$true] %s2294_s10 }
 0x4cd   :  { %s2748_s14 = scalar_lea.vmem %s2295_s10, 256  ;;  %p2753_p13 = scmp.lt.s32.totalorder %s2295_s10, %s2295_s10 }
 0x4ce   :  { %v1011_v29 = vpop.f32.mrb[10].mxu1  ;;  %p2749_p12 = scmp.ne.s32.totalorder %s2295_s10, %s2748_s14  ;;  %p2754_p0 = scmp.lt.s32.totalorder %s2748_s14, %s2748_s14 }
 0x4cf   :  { %v2488_v30 = vpop.f32.mrb[11].mxu1  ;;  %2490 = vmatpush3.msra.mxu0 %v1011_v29 }
 0x4d0   :  { %2499 = vmatprep.subr.mxu0 %v2785_v14  ;;  %p2755_p1 = por %p2754_p0, %p2753_p13 }
 0x4d2   :  { %p2756_p2 = pnand %p2755_p1, %p2749_p12 }
 0x4d5   :  { %v1163_v31 = vpop.f32.mrb[12].mxu1 }
 0x4d6   :  { %v2498_v33 = vpop.f32.mrb[13].mxu1  ;;  %v1167_v39 = vsel %vm2992_vm3, -inf, %v1163_v31 }
 0x4d7   :  { %v1168_v40 = vsel %vm376_vm2, %v1167_v39, -inf }
 0x529   :  { %v931_v34 = vpop.xlane.xlu0 %930 }
 0x52a   :  { %v932_v36 = vsub.f32 %v928_v20, %v931_v34 }
 0x52c   :  { %v933_v38 = vmul.f32 1.442695, %v932_v36 }
 0x52d   :  { %v1181_v46 = vpop.permute.xlu0 %1180 }
 0x52e   :  { %2614 = vpow2.f32 %v933_v38 }
 0x531   :  { %v1499_v49 = vpop.permute.xlu0 %1498 }
 0x538   :  { %v2615_v37 = vpop.eup %2614 }
 0x539   :  { %v935_v27 = vsel %vm376_vm2, %v2615_v37, 0.0 }
 0x53a   :  { %936 = vadd.xlane.f32.xlu1 %v935_v27 }
 0x54b   :  { %1500 = vrot.lane.b32.xlu1 %v2948_v24, %s2787_s30 }
 0x56f   :  { %1169 = vmax.xlane.f32.xlu1 %v1168_v40 }
 0x5c7   :  { %v937_v41 = vpop.xlane.xlu1 %936 }
 0x5c8   :  { %2616 = vrcp.f32 %v937_v41 }
 0x5cb   :  { %v1501_v48 = vpop.permute.xlu1 %1500 }
 0x5d2   :  { %v2617_v42 = vpop.eup %2616 }
 0x5d3   :  { %v939_v44 = vmul.f32 %v2617_v42, %v2615_v37 }
 0x5d5   :  { %2492 = vmatmul.mubr.msk.f32.vlgmr.msra.gmra.mrb[10].mxu0 %vm376_vm2, %v939_v44 }
 0x5d6   :  { %2500 = vmatpush3.msra.mxu0 %v3054_v45  ;;  %2501 = vmatprep.mubr.msk.f32.mxu0 %vm2786_vm1, %v2785_v14 }
 0x5d7   :  { %2509 = vmatprep.subr.mxu0 %v2785_v14 }
 0x5d9   :  { %2502 = vmatmul.mubr.msk.f32.vlgmr.msra.gmra.mrb[12].mxu0 %vm376_vm2, %v1181_v46 }
 0x5da   :  { %2511 = vmatprep.mubr.msk.f32.mxu0 %vm2786_vm1, %v2785_v14 }
 0x5dd   :  { %2510 = vmatpush3.xpose.msk.msra.mxu0 %vm376_vm2, %v2948_v24 }
 0x5de   :  { %2519 = vmatprep.subr.mxu0 %v2785_v14 }
 0x5e0   :  { %2512 = vmatmul.mubr.msk.f32.vlgmr.msra.gmra.mrb[14].mxu0 %vm376_vm2, %v3043_v23 }
 0x5e1   :  { %2520 = vmatpush3.xpose.msk.msra.mxu0 %vm376_vm2, %v1501_v48  ;;  %2521 = vmatprep.mubr.msk.f32.mxu0 %vm2786_vm1, %v2785_v14 }
 0x5e2   :  { %2529 = vmatprep.subr.mxu0 %v2785_v14 }
 0x5e4   :  { %2522 = vmatmul.mubr.msk.f32.vlgmr.msra.gmra.mrb[16].mxu0 %vm376_vm2, %v1499_v49 }
 0x5e5   :  { %2531 = vmatprep.mubr.msk.f32.mxu0 %vm2786_vm1, %v2785_v14 }
 0x5fc   :  { %v1170_v50 = vpop.xlane.xlu1 %1169 }
 0x5fd   :  { %v1171_v51 = vsub.f32 %v1167_v39, %v1170_v50 }
 0x5ff   :  { %v1172_v52 = vmul.f32 1.442695, %v1171_v51 }
 0x601   :  { %2618 = vpow2.f32 %v1172_v52 }
 0x60b   :  { %v2619_v53 = vpop.eup %2618 }
 0x60c   :  { %v1174_v54 = vsel %vm376_vm2, %v2619_v53, 0.0 }
 0x60d   :  { %1175 = vadd.xlane.f32.xlu0 %v1174_v54 }
 0x623   :  { %1589 = vrot.lane.b32.xlu0 %v2970_v35, %s2787_s30 }
 0x627   :  { %1809 = vrot.lane.b32.xlu0 %v3043_v23, %s2788_s6 }
 0x69a   :  { %v1176_v55 = vpop.xlane.xlu0 %1175 }
 0x69b   :  { %2620 = vrcp.f32 %v1176_v55 }
 0x6a5   :  { %v2621_v57 = vpop.eup %2620 }
 0x6a6   :  { %v1178_v60 = vmul.f32 %v2621_v57, %v2619_v53 }
 0x6a8   :  { %v1084_v56 = vpop.f32.mrb[10].mxu0 }
 0x6a9   :  { %v1088_v58 = vadd.f32 %v1084_v56, %v847_v26  ;;  %v2493_v59 = vpop.f32.mrb[11].mxu0 }
 0x6ac   :  { %v1250_v61 = vpop.f32.mrb[12].mxu0 }
 0x6ad   :  { %v2503_v62 = vpop.f32.mrb[13].mxu0  ;;  %2505 = vmatpush3.msra.mxu1 %v1250_v61 }
 0x6ae   :  { %2507 = vmatmul.mubr.msk.f32.vlgmr.msra.gmra.mrb[14].mxu1 %vm376_vm2, %v1178_v60  ;;  %2514 = vmatprep.subr.mxu1 %v2785_v14 }
 0x6af   :  { %2515 = vmatpush3.msra.mxu1 %v2963_v32  ;;  %2516 = vmatprep.mubr.msk.f32.mxu1 %vm2786_vm1, %v2785_v14  ;;  %v1590_v32 = vpop.permute.xlu0 %1589 }
 0x6b0   :  { %2524 = vmatprep.subr.mxu1 %v2785_v14 }
 0x6b2   :  { %2517 = vmatmul.mubr.msk.f32.vlgmr.msra.gmra.mrb[16].mxu1 %vm376_vm2, %v2970_v35 }
 0x6b3   :  { %v1408_v63 = vpop.f32.mrb[14].mxu0  ;;  %2525 = vmatpush3.msra.mxu1 %v2985_v43  ;;  %2526 = vmatprep.mubr.msk.f32.mxu1 %vm2786_vm1, %v2785_v14  ;;  %v1810_v11 = vpop.permute.xlu0 %1809 }
 0x6b4   :  { %v1412_v0 = vsel %vm2992_vm3, -inf, %v1408_v63  ;;  %v2513_v1 = vpop.f32.mrb[15].mxu0  ;;  %2534 = vmatprep.subr.mxu1 %v2785_v14 }
 0x6b5   :  { %v1413_v2 = vsel %vm376_vm2, %v1412_v0, -inf }
 0x6b6   :  { %1414 = vmax.xlane.f32.xlu0 %v1413_v2  ;;  %2527 = vmatmul.mubr.msk.f32.vlgmr.msra.gmra.mrb[18].mxu1 %vm376_vm2, %v1590_v32 }
 0x6b7   :  { %v1572_v3 = vpop.f32.mrb[16].mxu0  ;;  %2536 = vmatprep.mubr.msk.f32.mxu1 %vm2786_vm1, %v2785_v14 }
 0x6b8   :  { %v1576_v43 = vsel %vm2992_vm3, -inf, %v1572_v3  ;;  %v2523_v4 = vpop.f32.mrb[17].mxu0 }
 0x6b9   :  { %v1577_v5 = vsel %vm376_vm2, %v1576_v43, -inf }
 0x6ba   :  { %1578 = vmax.xlane.f32.xlu1 %v1577_v5 }
 0x6cc   :  { %1900 = vrot.lane.b32.xlu0 %v2970_v35, %s2788_s6 }
 0x6d0   :  { %2048 = vrot.lane.b32.xlu0 %v3043_v23, %s2789_s11 }
 0x743   :  { %v1415_v13 = vpop.xlane.xlu0 %1414 }
 0x744   :  { %v1416_v15 = vsub.f32 %v1412_v0, %v1415_v13 }
 0x746   :  { %v1417_v16 = vmul.f32 1.442695, %v1416_v15 }
 0x747   :  { %v1579_v6 = vpop.xlane.xlu1 %1578  ;;  %v1901_v37 = vpop.permute.xlu0 %1900 }
 0x748   :  { %v1580_v7 = vsub.f32 %v1576_v43, %v1579_v6 }
 0x74a   :  { %v1581_v8 = vmul.f32 1.442695, %v1580_v7 }
 0x74b   :  { %v2049_v39 = vpop.permute.xlu0 %2048 }
 0x74c   :  { %2622 = vpow2.f32 %v1581_v8 }
 0x74d   :  { %2624 = vpow2.f32 %v1417_v16 }
 0x756   :  { %v2623_v9 = vpop.eup %2622 }
 0x757   :  { %v1583_v10 = vsel %vm376_vm2, %v2623_v9, 0.0  ;;  %v2625_v25 = vpop.eup %2624 }
 0x758   :  { %1584 = vadd.xlane.f32.xlu1 %v1583_v10  ;;  %v1419_v29 = vsel %vm376_vm2, %v2625_v25, 0.0 }
 0x769   :  { %1811 = vrot.lane.b32.xlu1 %v2948_v24, %s2788_s6 }
 0x781   :  { %v1323_v18 = vpop.f32.mrb[14].mxu1 }
 0x782   :  { %v1327_v19 = vadd.f32 %v1323_v18, %v1088_v58  ;;  %v2508_v20 = vpop.f32.mrb[15].mxu1 }
 0x784   :  { %v1334_v21 = vadd.f32 %v3112_v17, %v1327_v19 }
 0x785   :  { %v1494_v22 = vpop.f32.mrb[16].mxu1 }
 0x786   :  { %1335 = vst [vmem:[#allocation11] sm:$0xff] %v1334_v21  ;;  %v2518_v23 = vpop.f32.mrb[17].mxu1  ;;  %2535 = vmatpush3.msra.mxu1 %v1494_v22 }
 0x787   :  { %2544 = vmatprep.subr.mxu1 %v2785_v14 }
 0x789   :  { %v1659_v26 = vpop.f32.mrb[18].mxu1 }
 0x78a   :  { %v2528_v28 = vpop.f32.mrb[19].mxu1  ;;  %2530 = vmatpush3.msra.mxu0 %v1659_v26 }
 0x78b   :  { %2539 = vmatprep.subr.mxu0 %v2785_v14 }
 0x78d   :  { %1420 = vadd.xlane.f32.xlu1 %v1419_v29 }
 0x79e   :  { %2050 = vrot.lane.b32.xlu1 %v2948_v24, %s2789_s11 }
 0x7e5   :  { %v1585_v30 = vpop.xlane.xlu1 %1584 }
 0x7e6   :  { %2626 = vrcp.f32 %v1585_v30 }
 0x7e9   :  { %v1812_v34 = vpop.permute.xlu1 %1811 }
 0x7f0   :  { %v2627_v31 = vpop.eup %2626 }
 0x7f1   :  { %v1587_v33 = vmul.f32 %v2627_v31, %v2623_v9 }
 0x7f3   :  { %2532 = vmatmul.mubr.msk.f32.vlgmr.msra.gmra.mrb[18].mxu0 %vm376_vm2, %v1587_v33 }
 0x7f4   :  { %2540 = vmatpush3.xpose.msk.msra.mxu0 %vm376_vm2, %v1812_v34  ;;  %2541 = vmatprep.mubr.msk.f32.mxu0 %vm2786_vm1, %v2785_v14 }
 0x7f5   :  { %2549 = vmatprep.subr.mxu0 %v2785_v14 }
 0x7f7   :  { %2542 = vmatmul.mubr.msk.f32.vlgmr.msra.gmra.mrb[20].mxu0 %vm376_vm2, %v1810_v11 }
 0x7f8   :  { %2551 = vmatprep.mubr.msk.f32.mxu0 %vm2786_vm1, %v2785_v14 }
 0x81a   :  { %v1421_v24 = vpop.xlane.xlu1 %1420 }
 0x81b   :  { %2628 = vrcp.f32 %v1421_v24 }
 0x81e   :  { %v2051_v27 = vpop.permute.xlu1 %2050 }
 0x825   :  { %v2629_v36 = vpop.eup %2628 }
 0x826   :  { %v1423_v38 = vmul.f32 %v2629_v36, %v2625_v25 }
 0x828   :  { %2537 = vmatmul.mubr.msk.f32.vlgmr.msra.gmra.mrb[20].mxu1 %vm376_vm2, %v1423_v38 }
 0x829   :  { %2545 = vmatpush3.msra.mxu1 %v3022_v12  ;;  %2546 = vmatprep.mubr.msk.f32.mxu1 %vm2786_vm1, %v2785_v14 }
 0x82a   :  { %2554 = vmatprep.subr.mxu1 %v2785_v14 }
 0x82c   :  { %2547 = vmatmul.mubr.msk.f32.vlgmr.msra.gmra.mrb[22].mxu1 %vm376_vm2, %v1901_v37 }
 0x82d   :  { %2556 = vmatprep.mubr.msk.f32.mxu1 %vm2786_vm1, %v2785_v14 }
 0x830   :  { %2555 = vmatpush3.xpose.msk.msra.mxu1 %vm376_vm2, %v2051_v27 }
 0x831   :  { %2564 = vmatprep.subr.mxu1 %v2785_v14 }
 0x833   :  { %2557 = vmatmul.mubr.msk.f32.vlgmr.msra.gmra.mrb[24].mxu1 %vm376_vm2, %v2049_v39 }
 0x834   :  { %2566 = vmatprep.mubr.msk.f32.mxu1 %vm2786_vm1, %v2785_v14 }
 0x8c6   :  { %v1732_v12 = vpop.f32.mrb[18].mxu0 }
 0x8c7   :  { %v2533_v40 = vpop.f32.mrb[19].mxu0 }
 0x8ca   :  { %v1883_v41 = vpop.f32.mrb[20].mxu0 }
 0x8cb   :  { %v1887_v42 = vsel %vm2992_vm3, -inf, %v1883_v41  ;;  %v2543_v44 = vpop.f32.mrb[21].mxu0 }
 0x8cc   :  { %v1888_v46 = vsel %vm376_vm2, %v1887_v42, -inf }
 0x8cd   :  { %1889 = vmax.xlane.f32.xlu1 %v1888_v46 }
 0x8fb   :  { %v1805_v48 = vpop.f32.mrb[20].mxu1 }
 0x8fc   :  { %v1806_v49 = vadd.f32 %v1805_v48, %v1732_v12  ;;  %v2538_v50 = vpop.f32.mrb[21].mxu1 }
 0x8ff   :  { %v1970_v51 = vpop.f32.mrb[22].mxu1 }
 0x900   :  { %v2548_v52 = vpop.f32.mrb[23].mxu1  ;;  %2550 = vmatpush3.msra.mxu0 %v1970_v51 }
 0x901   :  { %2559 = vmatprep.subr.mxu0 %v2785_v14 }
 0x906   :  { %v2122_v53 = vpop.f32.mrb[24].mxu1 }
 0x907   :  { %v2126_v54 = vsel %vm2992_vm3, -inf, %v2122_v53  ;;  %v2558_v55 = vpop.f32.mrb[25].mxu1 }
 0x908   :  { %v2127_v56 = vsel %vm376_vm2, %v2126_v54, -inf }
 0x909   :  { %2128 = vmax.xlane.f32.xlu1 %v2127_v56 }
 0x95a   :  { %v1890_v57 = vpop.xlane.xlu1 %1889 }
 0x95b   :  { %v1891_v58 = vsub.f32 %v1887_v42, %v1890_v57 }
 0x95d   :  { %v1892_v59 = vmul.f32 1.442695, %v1891_v58 }
 0x95f   :  { %2630 = vpow2.f32 %v1892_v59 }
 0x969   :  { %v2631_v60 = vpop.eup %2630 }
 0x96a   :  { %v1894_v61 = vsel %vm376_vm2, %v2631_v60, 0.0 }
 0x96b   :  { %1895 = vadd.xlane.f32.xlu0 %v1894_v61 }
 0x981   :  { %2139 = vrot.lane.b32.xlu0 %v2970_v35, %s2789_s11 }
 0x996   :  { %v2129_v62 = vpop.xlane.xlu1 %2128 }
 0x997   :  { %v2130_v63 = vsub.f32 %v2126_v54, %v2129_v62 }
 0x999   :  { %v2131_v0 = vmul.f32 1.442695, %v2130_v63 }
 0x99b   :  { %2632 = vpow2.f32 %v2131_v0 }
 0x9a5   :  { %v2633_v47 = vpop.eup %2632 }
 0x9a6   :  { %v2133_v1 = vsel %vm376_vm2, %v2633_v47, 0.0 }
 0x9a7   :  { %2134 = vadd.xlane.f32.xlu1 %v2133_v1 }
 0x9f8   :  { %v1896_v32 = vpop.xlane.xlu0 %1895 }
 0x9f9   :  { %2634 = vrcp.f32 %v1896_v32 }
 0x9fc   :  { %v2140_v35 = vpop.permute.xlu0 %2139 }
 0xa03   :  { %v2635_v2 = vpop.eup %2634 }
 0xa04   :  { %v1898_v3 = vmul.f32 %v2635_v2, %v2631_v60 }
 0xa06   :  { %2552 = vmatmul.mubr.msk.f32.vlgmr.msra.gmra.mrb[22].mxu0 %vm376_vm2, %v1898_v3 }
 0xa07   :  { %2560 = vmatpush3.msra.mxu0 %v3054_v45  ;;  %2561 = vmatprep.mubr.msk.f32.mxu0 %vm2786_vm1, %v2785_v14 }
 0xa0a   :  { %2562 = vmatmul.mubr.msk.f32.vlgmr.msra.gmra.mrb[24].mxu0 %vm376_vm2, %v2140_v35 }
 0xa34   :  { %v2135_v43 = vpop.xlane.xlu1 %2134 }
 0xa35   :  { %2636 = vrcp.f32 %v2135_v43 }
 0xa3f   :  { %v2637_v5 = vpop.eup %2636 }
 0xa40   :  { %v2137_v8 = vmul.f32 %v2637_v5, %v2633_v47 }
 0xad9   :  { %v2043_v4 = vpop.f32.mrb[22].mxu0 }
 0xada   :  { %v2047_v6 = vadd.f32 %v2043_v4, %v1806_v49  ;;  %v2553_v7 = vpop.f32.mrb[23].mxu0 }
 0xadd   :  { %v2209_v9 = vpop.f32.mrb[24].mxu0 }
 0xade   :  { %v2563_v10 = vpop.f32.mrb[25].mxu0  ;;  %2565 = vmatpush3.msra.mxu1 %v2209_v9 }
 0xadf   :  { %2567 = vmatmul.mubr.msk.f32.vlgmr.msra.gmra.mrb[26].mxu1 %vm376_vm2, %v2137_v8 }
 0xbb2   :  { %v2282_v11 = vpop.f32.mrb[26].mxu1 }
 0xbb3   :  { %v2286_v45 = vadd.f32 %v2282_v11, %v2047_v6  ;;  %v2568_v14 = vpop.f32.mrb[27].mxu1 }
 0xbb5   :  { %v2287_v13 = vadd.f32 %v3112_v17, %v2286_v45 }
 0xbb7   :  { %2288 = vst [vmem:[#allocation11 + $0x8] sm:$0xff] %v2287_v13 }
 0xbb8   :  { %2759 = shalt.err (!%p2756_p2)
}
 0xbb9   :  { %s2760_s16 = scalar_lea.hbm %s3183_s9, 256 }
 0xbba   :  { %p2761_p3 = scmp.ne.s32.totalorder %s3183_s9, %s2760_s16  ;;  %p2764_p4 = scmp.lt.u32.totalorder %s2760_s16, %s3183_s9 }
 0xbbc   :  { %p2766_p5 = pnand %p2764_p4, %p2761_p3 }
 0xbbe   :  { %2769 = shalt.err (!%p2766_p5)
}
 0xbbf   :  { %2300 = dma.vmem_to_hbm [thread:$0]  %s2295_s10, 256, %s3183_s9, [#allocation4], %s2780_s21, %s2780_s21, %s2781_s22  }
 0xbc0   :  { %2776 = dma.done.wait [#allocation4], 256  }
 0xbc1   :  { %2777 = vsyncadd [#allocation4], 4294967040 }
 0xbc2   :  { %2304 = vsyncpa [#allocation3], 1 }
 0xbc3   :  { %2305 = vsyncpa [#allocation6], 1 }
 0xbc4   :  { %2306 = vsyncpa [#allocation9], 1 }
 0xbc5   :  { %2307 = vsyncpa [#allocation4], 1 }

</bundles_post_ra>
